<compile_context>
chip_gen: v5e
topology: v5e:2x2
jax: 0.10.0
libtpu: 0.0.40
codegen_flags: <defaults>
</compile_context>

<pallas_src>
import jax
import jax.numpy as jnp
from jax import lax
from jax.experimental import pallas as pl
from jax.experimental.pallas import tpu as pltpu

NEG_SLOPE = 0.01  # nn.LeakyReLU default


def _mcms_kernel(x_ref, w1_ref, w2_ref, o_ref):
    """One grid step == one group of G parts (parts packed into the lane dim).

    x_ref  : (1, N, S, G*C)        channels/parts-packed input slab
    w1_ref : (NG, 3*G*C, 2*G*H)    fused+block-diag first-layer conv weights (resident)
    w2_ref : (NG, 3*2*G*H, 2*G*C)  fused+block-diag second-layer conv weights (resident)
    o_ref  : (1, N, S, G*C)
    """
    gi = pl.program_id(0)
    _, n, s, gc = x_ref.shape
    gh2 = w1_ref.shape[2]                       # 2*G*H

    x = x_ref[0].astype(jnp.float32)            # (N, S, GC)

    # ---- shifted views along the sequence dim (built in registers) --------
    xl1, xr1 = x[:, : s - 1, :], x[:, 1:, :]
    xl2, xr2 = x[:, : s - 2, :], x[:, 2:, :]
    z1 = jnp.zeros((n, 1, gc), jnp.float32)
    z2 = jnp.zeros((n, 2, gc), jnp.float32)
    m1 = jnp.full((n, 1, gc), -jnp.inf, jnp.float32)
    m2 = jnp.full((n, 2, gc), -jnp.inf, jnp.float32)

    # zero-padded shifts (for avg-pool and conv patches; matches conv padding)
    xm1 = jnp.concatenate([z1, xl1], axis=1)    # x[t-1]
    xp1 = jnp.concatenate([xr1, z1], axis=1)    # x[t+1]
    xm2 = jnp.concatenate([z2, xl2], axis=1)    # x[t-2]
    xp2 = jnp.concatenate([xr2, z2], axis=1)    # x[t+2]
    # -inf-padded shifts (max-pool ignores padding)
    xm1n = jnp.concatenate([m1, xl1], axis=1)
    xp1n = jnp.concatenate([xr1, m1], axis=1)
    xm2n = jnp.concatenate([m2, xl2], axis=1)
    xp2n = jnp.concatenate([xr2, m2], axis=1)

    # ---- avg+max pooling (win 3 / pad 1 and win 5 / pad 2) ----------------
    # AvgPool1d default count_include_pad=True -> always divide by the window.
    avg3 = (xm1 + x + xp1) * (1.0 / 3.0)
    avg5 = (xm2 + xm1 + x + xp1 + xp2) * (1.0 / 5.0)
    max3 = jnp.maximum(jnp.maximum(xm1n, x), xp1n)
    max5 = jnp.maximum(max3, jnp.maximum(xm2n, xp2n))
    pool3 = avg3 + max3
    pool5 = avg5 + max5

    # ---- im2col patches: K ordering (tap, part, channel) -> (N*S, 3*GC) ---
    patches = jnp.concatenate([xm1, x, xp1], axis=-1).reshape(n * s, 3 * gc)

    # ---- fused first-layer conv (both branches, all G parts): 1 matmul ----
    w1 = w1_ref[gi]                                        # (3*GC, 2*GH)
    h = jnp.dot(patches, w1, preferred_element_type=jnp.float32)
    h = jnp.where(h > 0, h, NEG_SLOPE * h)                 # LeakyReLU
    h3 = h.reshape(n, s, gh2)

    # hidden-feature patches for the second layer (zero padding = conv pad 1)
    zh = jnp.zeros((n, 1, gh2), jnp.float32)
    hm1 = jnp.concatenate([zh, h3[:, : s - 1, :]], axis=1)
    hp1 = jnp.concatenate([h3[:, 1:, :], zh], axis=1)
    hpatches = jnp.concatenate([hm1, h3, hp1], axis=-1).reshape(n * s, 3 * gh2)

    # ---- fused second-layer conv (both branches): 1 matmul ----------------
    w2 = w2_ref[gi]                                        # (3*2*GH, 2*GC)
    logits = jnp.dot(hpatches, w2, preferred_element_type=jnp.float32)
    # numerically-safe sigmoid (exp on EUP; exact divide keeps inf -> 0 clean)
    scores = 1.0 / (1.0 + jnp.exp(-logits))
    scores = scores.reshape(n, s, 2 * gc)
    scores_a = scores[:, :, :gc]                           # conv3x1 branch
    scores_b = scores[:, :, gc:]                           # conv3x3 branch

    # ---- gate, combine, single lane-dense store ----------------------------
    o_ref[0] = (pool3 * scores_a + pool5 * scores_b).astype(o_ref.dtype)


def mcms_forward(x, w1_3x1, w2_3x1, w1_3x3, w2_3x3, group_size=4):
    """x: (N, C, S, P) as in PyTorch.  Per-part conv weights in PyTorch layout:
       w1_3x1, w1_3x3 : (P, hidden, C, 3)
       w2_3x1         : (P, C, hidden, 1)
       w2_3x3         : (P, C, hidden, 3)
    Returns (N, C, S, P)."""
    n, c, s, p = x.shape
    hid = w1_3x1.shape[1]
    f32 = jnp.float32

    g = max(1, group_size)
    while p % g != 0:           # fall back to a divisor of P
        g -= 1
    ng = p // g
    gc = g * c
    gh2 = 2 * g * hid

    # ---- pack parts into the lane dim: (N,C,S,P) -> (NG, N, S, G*C) -------
    x_p = jnp.transpose(x, (3, 0, 2, 1))                              # (P,N,S,C)
    x_p = x_p.reshape(ng, g, n, s, c).transpose(0, 2, 3, 1, 4).reshape(ng, n, s, gc)

    eye = jnp.eye(g, dtype=f32)

    # ---- first layer: fold taps into K, fuse branches, block-diag groups --
    # w[o,i,k] -> w[k, i, o];  cols = [branch-a H | branch-b H]
    w1a = jnp.transpose(w1_3x1, (0, 3, 2, 1)).astype(f32)             # (P,3,C,H)
    w1b = jnp.transpose(w1_3x3, (0, 3, 2, 1)).astype(f32)             # (P,3,C,H)
    w1f = jnp.concatenate([w1a, w1b], axis=-1)                        # (P,3,C,2H)
    w1bd = jnp.einsum('ngtch,gk->ntgckh',
                      w1f.reshape(ng, g, 3, c, 2 * hid), eye)
    w1bd = w1bd.reshape(ng, 3 * gc, gh2)                              # (NG,3GC,2GH)

    # ---- second layer: fuse the 1x1 (branch a) and k=3 (branch b) convs ---
    w2a_f = jnp.transpose(w2_3x1[..., 0], (0, 2, 1)).astype(f32)      # (P,H,C)
    w2b_f = jnp.transpose(w2_3x3, (0, 3, 2, 1)).astype(f32)           # (P,3,H,C)
    pa = jnp.zeros((p, 3, hid, 2, c), f32).at[:, 1, :, 0, :].set(w2a_f)
    pb = jnp.zeros((p, 3, hid, 2, c), f32).at[:, :, :, 1, :].set(w2b_f)
    w2f = jnp.concatenate([pa, pb], axis=2)                           # (P,3,2H,2,C)
    w2bd = jnp.einsum('ngthbc,gk->ntghbkc',
                      w2f.reshape(ng, g, 3, 2 * hid, 2, c), eye)
    w2bd = w2bd.reshape(ng, 3 * gh2, 2 * gc)                          # (NG,6GH,2GC)

    out_p = pl.pallas_call(
        _mcms_kernel,
        out_shape=jax.ShapeDtypeStruct((ng, n, s, gc), x.dtype),
        grid=(ng,),
        in_specs=[
            pl.BlockSpec((1, n, s, gc), lambda i: (i, 0, 0, 0)),
            # full-array weight blocks with constant index -> DMA'd once,
            # resident in VMEM across all grid steps
            pl.BlockSpec((ng, 3 * gc, gh2), lambda i: (0, 0, 0)),
            pl.BlockSpec((ng, 3 * gh2, 2 * gc), lambda i: (0, 0, 0)),
        ],
        out_specs=pl.BlockSpec((1, n, s, gc), lambda i: (i, 0, 0, 0)),
        compiler_params=pltpu.CompilerParams(
            dimension_semantics=("parallel",)),
    )(x_p, w1bd, w2bd)

    # ---- unpack: (NG, N, S, G*C) -> (N, C, S, P) ---------------------------
    out = out_p.reshape(ng, n, s, g, c).transpose(1, 4, 2, 0, 3).reshape(n, c, s, p)
    return out


# ---------------------------- pure-XLA reference ----------------------------
def _mcms_ref(x, w1_3x1, w2_3x1, w1_3x3, w2_3x3):
    n, c, s, p = x.shape
    xp = jnp.transpose(x, (3, 0, 2, 1))                       # (P, N, S, C)

    def conv1d(inp, w):          # inp (N, S, Cin), w (Cout, Cin, k), SAME-style pad
        k = w.shape[-1]
        pad = (k - 1) // 2
        return lax.conv_general_dilated(
            inp, jnp.transpose(w, (2, 1, 0)), (1,), [(pad, pad)],
            dimension_numbers=("NWC", "WIO", "NWC"))

    def pools(inp, k):
        pad = (k - 1) // 2
        avg = lax.reduce_window(inp, 0.0, lax.add, (1, k, 1), (1, 1, 1),
                                [(0, 0), (pad, pad), (0, 0)]) / float(k)
        mx = lax.reduce_window(inp, -jnp.inf, lax.max, (1, k, 1), (1, 1, 1),
                               [(0, 0), (pad, pad), (0, 0)])
        return avg + mx

    def per_part(xi, wa1, wa2, wb1, wb2):
        sa = jax.nn.sigmoid(conv1d(jax.nn.leaky_relu(conv1d(xi, wa1), 0.01), wa2))
        sb = jax.nn.sigmoid(conv1d(jax.nn.leaky_relu(conv1d(xi, wb1), 0.01), wb2))
        return pools(xi, 3) * sa + pools(xi, 5) * sb

    out_p = jax.vmap(per_part)(xp, w1_3x1, w2_3x1, w1_3x3, w2_3x3)
    return jnp.transpose(out_p, (1, 3, 2, 0))


if __name__ == "__main__":
    key = jax.random.PRNGKey(0)
    # small but representative shapes: batch=2, channels=32, seq=16, parts=32
    N, C, S, P, SQUEEZE = 2, 32, 16, 32, 4
    HID = C // SQUEEZE

    kx, k1, k2, k3, k4 = jax.random.split(key, 5)
    x = jax.random.normal(kx, (N, C, S, P), dtype=jnp.float32)
    # per-part weights (clones() gives each part its own parameters) in
    # PyTorch Conv1d layout (out_channels, in_channels, kernel), bias-free.
    w1_3x1 = 0.1 * jax.random.normal(k1, (P, HID, C, 3), dtype=jnp.float32)
    w2_3x1 = 0.1 * jax.random.normal(k2, (P, C, HID, 1), dtype=jnp.float32)
    w1_3x3 = 0.1 * jax.random.normal(k3, (P, HID, C, 3), dtype=jnp.float32)
    w2_3x3 = 0.1 * jax.random.normal(k4, (P, C, HID, 3), dtype=jnp.float32)

    out = mcms_forward(x, w1_3x1, w2_3x1, w1_3x3, w2_3x3)
    out = jax.block_until_ready(out)

    ref = _mcms_ref(x, w1_3x1, w2_3x1, w1_3x3, w2_3x3)
    assert out.shape == (N, C, S, P)
    assert jnp.allclose(out, ref, atol=1e-3, rtol=1e-3), \
        float(jnp.max(jnp.abs(out - ref)))

    print("KERNEL_OK")
</pallas_src>

<mosaic_0001>
module attributes {stable_mosaic.version = 11 : i64} {
  func.func @_mcms_kernel(%arg0: i32, %arg1: memref<1x2x16x128xf32, #tpu.memory_space<vmem>>, %arg2: memref<8x384x64xf32, #tpu.memory_space<vmem>>, %arg3: memref<8x192x256xf32, #tpu.memory_space<vmem>>, %arg4: memref<1x2x16x128xf32, #tpu.memory_space<vmem>>) attributes {dimension_semantics = [#tpu.dimension_semantics<parallel>], iteration_bounds = array<i64: 8>, scalar_prefetch = 0 : i64, scratch_operands = 0 : i64, tpu.core_type = #tpu.core_type<tc>, window_params = [{transform_indices = @transform_0, window_bounds = array<i64: 1, 2, 16, 128>}, {pipeline_mode = #tpu.pipeline_mode<synchronous>, transform_indices = @transform_1, window_bounds = array<i64: 8, 384, 64>}, {pipeline_mode = #tpu.pipeline_mode<synchronous>, transform_indices = @transform_2, window_bounds = array<i64: 8, 192, 256>}, {transform_indices = @transform_3, window_bounds = array<i64: 1, 2, 16, 128>}]} {
    %c0 = arith.constant 0 : index
    %c0_0 = arith.constant 0 : index
    %c0_1 = arith.constant 0 : index
    %c0_2 = arith.constant 0 : index
    %0 = vector.load %arg1[%c0, %c0_0, %c0_1, %c0_2] : memref<1x2x16x128xf32, #tpu.memory_space<vmem>>, vector<1x2x16x128xf32>
    %1 = vector.shape_cast %0 : vector<1x2x16x128xf32> to vector<2x16x128xf32>
    %2 = vector.extract_strided_slice %1 {offsets = [0, 0, 0], sizes = [2, 15, 128], strides = [1, 1, 1]} : vector<2x16x128xf32> to vector<2x15x128xf32>
    %3 = vector.extract_strided_slice %1 {offsets = [0, 1, 0], sizes = [2, 15, 128], strides = [1, 1, 1]} : vector<2x16x128xf32> to vector<2x15x128xf32>
    %4 = vector.extract_strided_slice %1 {offsets = [0, 0, 0], sizes = [2, 14, 128], strides = [1, 1, 1]} : vector<2x16x128xf32> to vector<2x14x128xf32>
    %5 = vector.extract_strided_slice %1 {offsets = [0, 2, 0], sizes = [2, 14, 128], strides = [1, 1, 1]} : vector<2x16x128xf32> to vector<2x14x128xf32>
    %cst = arith.constant 0.000000e+00 : f32
    %6 = vector.broadcast %cst : f32 to vector<2x1x128xf32>
    %cst_3 = arith.constant 0.000000e+00 : f32
    %7 = vector.broadcast %cst_3 : f32 to vector<2x2x128xf32>
    %cst_4 = arith.constant 0xFF800000 : f32
    %8 = vector.broadcast %cst_4 : f32 to vector<2x1x128xf32>
    %cst_5 = arith.constant 0xFF800000 : f32
    %9 = vector.broadcast %cst_5 : f32 to vector<2x2x128xf32>
    %10 = tpu.concatenate %6, %2 in 1 : vector<2x1x128xf32>, vector<2x15x128xf32> -> vector<2x16x128xf32>
    %11 = tpu.concatenate %3, %6 in 1 : vector<2x15x128xf32>, vector<2x1x128xf32> -> vector<2x16x128xf32>
    %12 = tpu.concatenate %7, %4 in 1 : vector<2x2x128xf32>, vector<2x14x128xf32> -> vector<2x16x128xf32>
    %13 = tpu.concatenate %5, %7 in 1 : vector<2x14x128xf32>, vector<2x2x128xf32> -> vector<2x16x128xf32>
    %14 = tpu.concatenate %8, %2 in 1 : vector<2x1x128xf32>, vector<2x15x128xf32> -> vector<2x16x128xf32>
    %15 = tpu.concatenate %3, %8 in 1 : vector<2x15x128xf32>, vector<2x1x128xf32> -> vector<2x16x128xf32>
    %16 = tpu.concatenate %9, %4 in 1 : vector<2x2x128xf32>, vector<2x14x128xf32> -> vector<2x16x128xf32>
    %17 = tpu.concatenate %5, %9 in 1 : vector<2x14x128xf32>, vector<2x2x128xf32> -> vector<2x16x128xf32>
    %18 = arith.addf %10, %1 : vector<2x16x128xf32>
    %19 = arith.addf %18, %11 : vector<2x16x128xf32>
    %cst_6 = arith.constant 0.333333343 : f32
    %20 = vector.broadcast %cst_6 : f32 to vector<2x16x128xf32>
    %21 = arith.mulf %19, %20 : vector<2x16x128xf32>
    %22 = arith.addf %12, %10 : vector<2x16x128xf32>
    %23 = arith.addf %22, %1 : vector<2x16x128xf32>
    %24 = arith.addf %23, %11 : vector<2x16x128xf32>
    %25 = arith.addf %24, %13 : vector<2x16x128xf32>
    %cst_7 = arith.constant 2.000000e-01 : f32
    %26 = vector.broadcast %cst_7 : f32 to vector<2x16x128xf32>
    %27 = arith.mulf %25, %26 : vector<2x16x128xf32>
    %28 = arith.maximumf %14, %1 : vector<2x16x128xf32>
    %29 = arith.maximumf %28, %15 : vector<2x16x128xf32>
    %30 = arith.maximumf %16, %17 : vector<2x16x128xf32>
    %31 = arith.maximumf %29, %30 : vector<2x16x128xf32>
    %32 = arith.addf %21, %29 : vector<2x16x128xf32>
    %33 = arith.addf %27, %31 : vector<2x16x128xf32>
    %34 = tpu.concatenate %10, %1, %11 in 2 : vector<2x16x128xf32>, vector<2x16x128xf32>, vector<2x16x128xf32> -> vector<2x16x384xf32>
    %35 = vector.shape_cast %34 : vector<2x16x384xf32> to vector<32x384xf32>
    %36 = arith.index_cast %arg0 : i32 to index
    %c0_8 = arith.constant 0 : index
    %c0_9 = arith.constant 0 : index
    %37 = vector.load %arg2[%36, %c0_8, %c0_9] : memref<8x384x64xf32, #tpu.memory_space<vmem>>, vector<1x384x64xf32>
    %38 = vector.shape_cast %37 : vector<1x384x64xf32> to vector<384x64xf32>
    %cst_10 = arith.constant dense<0.000000e+00> : vector<32x64xf32>
    %39 = tpu.matmul %35, %38, %cst_10 {dimension_numbers = #tpu.dot_dimension_numbers<[1], [0], [0], [1], [0, 0, 1, 1], [], []>} : vector<32x384xf32>, vector<384x64xf32>, vector<32x64xf32> -> vector<32x64xf32>
    %cst_11 = arith.constant 0.000000e+00 : f32
    %40 = vector.broadcast %cst_11 : f32 to vector<32x64xf32>
    %41 = arith.cmpf ogt, %39, %40 : vector<32x64xf32>
    %cst_12 = arith.constant 0.00999999977 : f32
    %42 = vector.broadcast %cst_12 : f32 to vector<32x64xf32>
    %43 = arith.mulf %42, %39 : vector<32x64xf32>
    %44 = arith.select %41, %39, %43 : vector<32x64xi1>, vector<32x64xf32>
    %45 = vector.shape_cast %44 : vector<32x64xf32> to vector<2x16x64xf32>
    %cst_13 = arith.constant 0.000000e+00 : f32
    %46 = vector.broadcast %cst_13 : f32 to vector<2x1x64xf32>
    %47 = vector.extract_strided_slice %45 {offsets = [0, 0, 0], sizes = [2, 15, 64], strides = [1, 1, 1]} : vector<2x16x64xf32> to vector<2x15x64xf32>
    %48 = tpu.concatenate %46, %47 in 1 : vector<2x1x64xf32>, vector<2x15x64xf32> -> vector<2x16x64xf32>
    %49 = vector.extract_strided_slice %45 {offsets = [0, 1, 0], sizes = [2, 15, 64], strides = [1, 1, 1]} : vector<2x16x64xf32> to vector<2x15x64xf32>
    %50 = tpu.concatenate %49, %46 in 1 : vector<2x15x64xf32>, vector<2x1x64xf32> -> vector<2x16x64xf32>
    %51 = tpu.concatenate %48, %45, %50 in 2 : vector<2x16x64xf32>, vector<2x16x64xf32>, vector<2x16x64xf32> -> vector<2x16x192xf32>
    %52 = vector.shape_cast %51 : vector<2x16x192xf32> to vector<32x192xf32>
    %53 = arith.index_cast %arg0 : i32 to index
    %c0_14 = arith.constant 0 : index
    %c0_15 = arith.constant 0 : index
    %54 = vector.load %arg3[%53, %c0_14, %c0_15] : memref<8x192x256xf32, #tpu.memory_space<vmem>>, vector<1x192x256xf32>
    %55 = vector.shape_cast %54 : vector<1x192x256xf32> to vector<192x256xf32>
    %cst_16 = arith.constant dense<0.000000e+00> : vector<32x256xf32>
    %56 = tpu.matmul %52, %55, %cst_16 {dimension_numbers = #tpu.dot_dimension_numbers<[1], [0], [0], [1], [0, 0, 1, 1], [], []>} : vector<32x192xf32>, vector<192x256xf32>, vector<32x256xf32> -> vector<32x256xf32>
    %cst_17 = arith.constant 0.000000e+00 : f32
    %57 = vector.broadcast %cst_17 : f32 to vector<32x256xf32>
    %58 = arith.subf %57, %56 : vector<32x256xf32>
    %59 = math.exp %58 : vector<32x256xf32>
    %cst_18 = arith.constant 1.000000e+00 : f32
    %60 = vector.broadcast %cst_18 : f32 to vector<32x256xf32>
    %61 = arith.addf %60, %59 : vector<32x256xf32>
    %cst_19 = arith.constant 1.000000e+00 : f32
    %62 = vector.broadcast %cst_19 : f32 to vector<32x256xf32>
    %63 = arith.divf %62, %61 : vector<32x256xf32>
    %64 = vector.shape_cast %63 : vector<32x256xf32> to vector<2x16x256xf32>
    %65 = vector.extract_strided_slice %64 {offsets = [0, 0, 0], sizes = [2, 16, 128], strides = [1, 1, 1]} : vector<2x16x256xf32> to vector<2x16x128xf32>
    %66 = vector.extract_strided_slice %64 {offsets = [0, 0, 128], sizes = [2, 16, 128], strides = [1, 1, 1]} : vector<2x16x256xf32> to vector<2x16x128xf32>
    %67 = arith.mulf %32, %65 : vector<2x16x128xf32>
    %68 = arith.mulf %33, %66 : vector<2x16x128xf32>
    %69 = arith.addf %67, %68 : vector<2x16x128xf32>
    %c0_20 = arith.constant 0 : index
    %c0_21 = arith.constant 0 : index
    %c0_22 = arith.constant 0 : index
    %c0_23 = arith.constant 0 : index
    %70 = vector.load %arg4[%c0_20, %c0_21, %c0_22, %c0_23] : memref<1x2x16x128xf32, #tpu.memory_space<vmem>>, vector<1x2x16x128xf32>
    %71 = vector.shape_cast %70 : vector<1x2x16x128xf32> to vector<2x16x128xf32>
    %72 = vector.shape_cast %69 : vector<2x16x128xf32> to vector<1x2x16x128xf32>
    tpu.vector_store %arg4[%c0_20, %c0_21, %c0_22, %c0_23], %72 {strides = array<i32>} : memref<1x2x16x128xf32, #tpu.memory_space<vmem>>, vector<1x2x16x128xf32>,
    return
  }
  func.func @transform_0(%arg0: i32) -> (i32, i32, i32, i32) {
    %c0_i32 = arith.constant 0 : i32
    %c0_i32_0 = arith.constant 0 : i32
    %c0_i32_1 = arith.constant 0 : i32
    %c0_i32_2 = arith.constant 0 : i32
    return %arg0, %c0_i32, %c0_i32_0, %c0_i32_1 : i32, i32, i32, i32
  }
  func.func @transform_1(%arg0: i32) -> (i32, i32, i32) {
    %c0_i32 = arith.constant 0 : i32
    %c0_i32_0 = arith.constant 0 : i32
    %c0_i32_1 = arith.constant 0 : i32
    %c0_i32_2 = arith.constant 0 : i32
    return %c0_i32, %c0_i32_0, %c0_i32_1 : i32, i32, i32
  }
  func.func @transform_2(%arg0: i32) -> (i32, i32, i32) {
    %c0_i32 = arith.constant 0 : i32
    %c0_i32_0 = arith.constant 0 : i32
    %c0_i32_1 = arith.constant 0 : i32
    %c0_i32_2 = arith.constant 0 : i32
    return %c0_i32, %c0_i32_0, %c0_i32_1 : i32, i32, i32
  }
  func.func @transform_3(%arg0: i32) -> (i32, i32, i32, i32) {
    %c0_i32 = arith.constant 0 : i32
    %c0_i32_0 = arith.constant 0 : i32
    %c0_i32_1 = arith.constant 0 : i32
    %c0_i32_2 = arith.constant 0 : i32
    return %arg0, %c0_i32, %c0_i32_0, %c0_i32_1 : i32, i32, i32, i32
  }
}

</mosaic_0001>

<bundles_post_ra>
// kernel: tpu_custom_call.1
= control target key start
LH: loop header
LB: loop body
LE: loop exit
PB: predicated region body
PF: predicated region fallthrough
CT: control target
= control target key end

     0   :  { %8 = vsyncpa [#allocation3], 0  ;;  %s1588_s0 = inlined_call_operand.vmem [shape: f32[8,2,16,128], index: 0, kind: input, shape index: {}]   ;;  %s1589_s1 = inlined_call_operand.vmem [shape: f32[8,384,64], index: 1, kind: input, shape index: {}]   ;;  %s1590_s2 = inlined_call_operand.vmem [shape: f32[8,192,256], index: 2, kind: input, shape index: {}]   ;;  %s1591_s3 = inlined_call_operand.hbm [shape: f32[8,2,16,128], index: 3, kind: output, shape index: {}]  }
   0x1   :  { %10 = vsyncpa [#allocation3 + $0x1], 0  ;;  %s1111_s12 = smov 0   ;;  %s1113_s13 = smov 0  }
   0x2   :  { %s1115_s14 = smov 0   ;;  %s1117_s15 = smov 0  }
   0x3 LB: > { %s1132_s16 = sadd.s32 4294967295, %s1086_s15   ;;  %s912_s17 = sadd.s32 4294967294, %s1086_s15   ;;  %s1086_s15 = sphi %s1117_s15, %s1601_s15   ;;  %s1082_s14 = sphi %s1115_s14, %s1600_s14   ;;  %s1078_s13 = sphi %s1113_s13, %s1599_s13   ;;  %s1074_s12 = sphi %s1111_s12, %s1598_s12  }
   0x4   : > { %s1136_s18 = sadd.s32 1, %s1086_s15   ;;  %s91_s19 = sadd.s32 1, %s1082_s14 }
   0x5   : > { %s88_s20 = ssub.s32 %s1086_s15, %s1136_s18  ;;  %p101_p0 = scmp.ne.s32.totalorder %s1082_s14, %s1078_s13 }
   0x6   : > { %p89_p1 = scmp.eq.s32.totalorder %s88_s20, 0  ;;  %p102_p2 = scmp.eq.s32.totalorder %s1132_s16, 7 }
   0x7   : > { %p107_p3 = scmp.ne.s32.totalorder %s1078_s13, %s1074_s12  ;;  %p108_p4 = scmp.eq.s32.totalorder %s912_s17, 7 }
   0x8   : > { %s1147_s21 = scalar_select %p89_p1, %s1082_s14, %s91_s19  }
   0x9   : > { %p1149_p5 = por %p102_p2, %p101_p0  ;;  %p1153_p6 = por %p108_p4, %p107_p3 }
   0xa   : > { %p915_p7 = scmp.ge.s32.totalorder %s1086_s15, 1  ;;  %p140_p8 = scmp.lt.s32.totalorder %s1086_s15, 9 }
   0xc   : > { %p141_p9 = pnand %p915_p7, %p140_p8 }
   0xd   : > { %s293_s24 = smul.u32 (!%p141_p9), 384, %s1132_s16  ;;  %p164_p10 = scmp.lt.s32.totalorder (!%p141_p9), %s1132_s16, 7 }
   0xe   : > { %144 = sbr.rel (%p141_p9) target bundleno = 526 (0x20e), region = 32  ;;  %s1088_s9 = smov (!%p141_p9), 64  }
   0xf   : > { %s1165_s27 = scalar_lea.vmem (!%p141_p9), %s1589_s1, %s293_s24  ;;  %s1360_s8 = scalar_lea.vmem (!%p141_p9), %s1590_s2, %s293_s24 }
  0x10   : > { %s161_s10 = sand.u32 (!%p141_p9), 1, %s1078_s13   ;;  %s941_s19 = sshll.u32 (!%p141_p9), %s1132_s16, 5 }
  0x11   : > { %s916_s11 = sshll.u32 (!%p141_p9), %s161_s10, 5  ;;  %s842_s25 = scalar_lea.hbm (!%p141_p9), %s1591_s3, %s941_s19 }
  0x12   : > { %s1503_s17 = scalar_lea.vmem (!%p141_p9), [#allocation2], %s916_s11  ;;  %s845_s26 = sshll.u32 (!%p141_p9), %s842_s25, 4  ;;  %s846_s26 = int_to_ptr.hbm [resolvable:$true] %s845_s26 }
  0x13   : > { %v342_v0 = vld [vmem:[%s1165_s27 + $0x178] sm:$0xff]  ;;  %v341_v1 = vld [vmem:[%s1165_s27 + $0x170] sm:$0xff]  ;;  %v340_v5 = vld [vmem:[%s1165_s27 + $0x168] sm:$0xff]  ;;  %s165_s28 = scalar_select %p164_p10, %s1132_s16, 7  ;;  %vm190_vm0 = vcmask 1046528   ;;  %vm203_vm1 = vcmask 1041408  }
  0x14   : > { %v310_v2 = vld [vmem:[%s1165_s27 + $0x78] sm:$0xff]  ;;  %401 = vmatpush.msra.mxu2 %v342_v0  ;;  %v309_v4 = vld [vmem:[%s1165_s27 + $0x70] sm:$0xff]  ;;  %v308_v7 = vld [vmem:[%s1165_s27 + $0x68] sm:$0xff]  ;;  %vm216_vm2 = vcmask 1045504   ;;  %vm177_vm3 = vcmask 1040384   ;;  %vm480_vm7 = vcmask 523264  }
  0x15   : > { %343 = vmatpush.msra.mxu0 %v310_v2  ;;  %v326_v3 = vld [vmem:[%s1165_s27 + $0xf8] sm:$0xff]  ;;  %v325_v6 = vld [vmem:[%s1165_s27 + $0xf0] sm:$0xff]  ;;  %v324_v8 = vld [vmem:[%s1165_s27 + $0xe8] sm:$0xff]  ;;  %s939_s29 = sshll.u32 %s165_s28, 5  ;;  %s843_s16 = sshll.u32 %s1503_s17, 4  ;;  %s844_s16 = int_to_ptr.vmem [resolvable:$true] %s843_s16 }
  0x16   : > { %372 = vmatpush.msra.mxu1 %v326_v3  ;;  %402 = vmatpush.msra.mxu2 %v341_v1  ;;  %v339_v9 = vld [vmem:[%s1165_s27 + $0x160] sm:$0xff]  ;;  %v338_v12 = vld [vmem:[%s1165_s27 + $0x158] sm:$0xff]  ;;  %v337_v15 = vld [vmem:[%s1165_s27 + $0x150] sm:$0xff]  ;;  %s1195_s5 = scalar_lea.vmem %s1588_s0, %s939_s29  ;;  %s1038_s28 = sshra.s32 %s846_s26, 4  ;;  %s1039_s28 = int_to_ptr.hbm [resolvable:$true] %s1038_s28 }
  0x17   : > { %344 = vmatpush.msra.mxu0 %v309_v4  ;;  %v307_v10 = vld [vmem:[%s1165_s27 + $0x60] sm:$0xff]  ;;  %v306_v13 = vld [vmem:[%s1165_s27 + $0x58] sm:$0xff]  ;;  %v305_v16 = vld [vmem:[%s1165_s27 + $0x50] sm:$0xff]  ;;  %s1040_s29 = scalar_lea.hbm %s1039_s28, 32  ;;  %p1045_p0 = scmp.lt.s32.totalorder %s1039_s28, %s1591_s3 }
  0x18   : > { %373 = vmatpush.msra.mxu1 %v325_v6  ;;  %403 = vmatpush.msra.mxu2 %v340_v5  ;;  %v323_v11 = vld [vmem:[%s1165_s27 + $0xe0] sm:$0xff]  ;;  %v322_v14 = vld [vmem:[%s1165_s27 + $0xd8] sm:$0xff]  ;;  %v321_v17 = vld [vmem:[%s1165_s27 + $0xd0] sm:$0xff]  ;;  %p1041_p11 = scmp.ne.s32.totalorder %s1039_s28, %s1040_s29 }
  0x19   : > { %345 = vmatpush.msra.mxu0 %v308_v7  ;;  %v336_v18 = vld [vmem:[%s1165_s27 + $0x148] sm:$0xff]  ;;  %v335_v21 = vld [vmem:[%s1165_s27 + $0x140] sm:$0xff]  ;;  %v334_v24 = vld [vmem:[%s1165_s27 + $0x138] sm:$0xff] }
  0x1a   : > { %374 = vmatpush.msra.mxu1 %v324_v8  ;;  %404 = vmatpush.msra.mxu2 %v339_v9  ;;  %v304_v19 = vld [vmem:[%s1165_s27 + $0x48] sm:$0xff]  ;;  %v303_v22 = vld [vmem:[%s1165_s27 + $0x40] sm:$0xff]  ;;  %v302_v25 = vld [vmem:[%s1165_s27 + $0x38] sm:$0xff]  ;;  %p1042_p12 = pnand %p1041_p11, %p1149_p5 }
  0x1b   : > { %346 = vmatpush.msra.mxu0 %v307_v10  ;;  %v320_v20 = vld [vmem:[%s1165_s27 + $0xc8] sm:$0xff]  ;;  %v319_v23 = vld [vmem:[%s1165_s27 + $0xc0] sm:$0xff]  ;;  %v318_v27 = vld [vmem:[%s1165_s27 + $0xb8] sm:$0xff] }
  0x1c   : > { %375 = vmatpush.msra.mxu1 %v323_v11  ;;  %405 = vmatpush.msra.mxu2 %v338_v12  ;;  %v1203_v26 = vld [vmem:[%s1195_s5] sm:$0xff]  ;;  %v1207_v28 = vld [vmem:[%s1195_s5 + $0x8] sm:$0xff]  ;;  %v333_v33 = vld [vmem:[%s1165_s27 + $0x130] sm:$0xff]  ;;  %p1043_p13 = pneg %p1042_p12 }
  0x1d   : > { %347 = vmatpush.msra.mxu0 %v306_v13  ;;  %v1210_v29 = vrot.slane %v1203_v26, 7  ;;  %v191_v30 = vrot.slane %v1203_v26, 1  ;;  %v204_v31 = vrot.slane %v1203_v26, 6  ;;  %v217_v32 = vrot.slane %v1203_v26, 2  ;;  %v301_v34 = vld [vmem:[%s1165_s27 + $0x30] sm:$0xff]  ;;  %v332_v43 = vld [vmem:[%s1165_s27 + $0x128] sm:$0xff]  ;;  %vm1309_vm4 = vmneg %vm177_vm3 }
  0x1e   : > { %376 = vmatpush.msra.mxu1 %v322_v14  ;;  %406 = vmatpush.msra.mxu2 %v337_v15  ;;  %v1218_v35 = vrot.slane %v1207_v28, 1  ;;  %v218_v36 = vrot.slane %v1207_v28, 2  ;;  %v179_v37 = vrot.slane %v1207_v28, 7  ;;  %v317_v38 = vld [vmem:[%s1165_s27 + $0xb0] sm:$0xff]  ;;  %v300_v44 = vld [vmem:[%s1165_s27 + $0x28] sm:$0xff]  ;;  %v331_v54 = vld [vmem:[%s1165_s27 + $0x120] sm:$0xff] }
  0x1f   : > { %348 = vmatpush.msra.mxu0 %v305_v16  ;;  %v188_v39 = vsel %vm177_vm3, 0.0, %v1210_v29  ;;  %v214_v40 = vsel %vm203_vm1, 0.0, %v204_v31  ;;  %v229_v41 = vsel %vm177_vm3, -inf, %v1210_v29  ;;  %v233_v42 = vsel %vm203_vm1, -inf, %v204_v31  ;;  %v316_v49 = vld [vmem:[%s1165_s27 + $0xa8] sm:$0xff]  ;;  %v299_v55 = vld [vmem:[%s1165_s27 + $0x20] sm:$0xff] }
  0x20   : > { %377 = vmatpush.msra.mxu1 %v321_v17  ;;  %407 = vmatpush.msra.mxu2 %v336_v18  ;;  %v1233_v45 = vsel %vm190_vm0, %v191_v30, %v1218_v35  ;;  %v219_v46 = vsel %vm216_vm2, %v217_v32, %v218_v36  ;;  %v237_v47 = vadd.f32 %v188_v39, %v1203_v26  ;;  %v201_v53 = vsel %vm190_vm0, %v1218_v35, 0.0  ;;  %v315_v60 = vld [vmem:[%s1165_s27 + $0xa0] sm:$0xff]  ;;  %v330_v1 = vld [vmem:[%s1165_s27 + $0x118] sm:$0xff]  ;;  %v1265_v7 = vld [vmem:[%s1195_s5 + $0x10] sm:$0xff] }
  0x21   : > { %349 = vmatpush.msra.mxu0 %v304_v19  ;;  %v249_v48 = vadd.f32 %v214_v40, %v188_v39  ;;  %v269_v50 = vmax.f32 %v229_v41, %v1203_v26  ;;  %v277_v51 = vmax.f32 %v233_v42, %v219_v46  ;;  %v1241_v52 = vsel %vm177_vm3, %v1210_v29, %v179_v37  ;;  %v298_v2 = vld [vmem:[%s1165_s27 + $0x18] sm:$0xff]  ;;  %v329_v14 = vld [vmem:[%s1165_s27 + $0x110] sm:$0xff]  ;;  %v296_v30 = vld [vmem:[%s1165_s27 + $0x8] sm:$0xff] }
  0x22   : > { %378 = vmatpush.msra.mxu1 %v320_v20  ;;  %408 = vmatpush.msra.mxu2 %v335_v21  ;;  %v241_v56 = vadd.f32 %v237_v47, %v1233_v45  ;;  %v205_v58 = vrot.slane %v1207_v28, 6  ;;  %v227_v59 = vsel %vm216_vm2, %v218_v36, 0.0  ;;  %v231_v62 = vsel %vm190_vm0, %v1218_v35, -inf  ;;  %v314_v8 = vld [vmem:[%s1165_s27 + $0x98] sm:$0xff]  ;;  %v297_v15 = vld [vmem:[%s1165_s27 + $0x10] sm:$0xff]  ;;  %v327_v40 = vld [vmem:[%s1165_s27 + $0x100] sm:$0xff] }
  0x23   : > { %350 = vmatpush.msra.mxu0 %v303_v22  ;;  %v253_v57 = vadd.f32 %v249_v48, %v1203_v26  ;;  %v273_v61 = vmax.f32 %v269_v50, %v1233_v45  ;;  %v235_v63 = vsel %vm216_vm2, %v218_v36, -inf  ;;  %v238_v0 = vadd.f32 %v1241_v52, %v1207_v28  ;;  %v1270_v12 = vld [vmem:[%s1195_s5 + $0x18] sm:$0xff]  ;;  %v313_v20 = vld [vmem:[%s1165_s27 + $0x90] sm:$0xff]  ;;  %v295_v42 = vld [vmem:[%s1165_s27] sm:$0xff]  ;;  %s1044_s5 = scalar_lea.hbm %s1591_s3, 256 }
  0x24   : > { %379 = vmatpush.msra.mxu1 %v319_v23  ;;  %409 = vmatpush.msra.mxu2 %v334_v24  ;;  %v245_v3 = vmul.f32 0.33333334, %v241_v56  ;;  %v206_v5 = vsel %vm203_vm1, %v204_v31, %v205_v58  ;;  %v270_v6 = vmax.f32 %v1241_v52, %v1207_v28  ;;  %v1273_v13 = vrot.slane %v1265_v7, 7  ;;  %v311_v47 = vld [vmem:[%s1165_s27 + $0x80] sm:$0xff]  ;;  %p1046_p1 = scmp.lt.s32.totalorder %s1044_s5, %s1040_s29 }
  0x25   : > { %351 = vmatpush.msra.mxu0 %v302_v25  ;;  %v257_v4 = vadd.f32 %v253_v57, %v1233_v45  ;;  %v281_v9 = vmax.f32 %v273_v61, %v277_v51  ;;  %v242_v10 = vadd.f32 %v238_v0, %v201_v53  ;;  %v250_v11 = vadd.f32 %v206_v5, %v1241_v52  ;;  %v328_v25 = vld [vmem:[%s1165_s27 + $0x108] sm:$0xff] }
  0x26   : > { %380 = vmatpush.msra.mxu1 %v318_v27  ;;  %410 = vmatpush.msra.mxu2 %v333_v33  ;;  %v1277_v17 = vadd.f32 %v273_v61, %v245_v3  ;;  %v274_v18 = vmax.f32 %v270_v6, %v231_v62  ;;  %v278_v19 = vmax.f32 %v206_v5, %v235_v63  ;;  %v189_v23 = vsel %vm177_vm3, 0.0, %v1273_v13  ;;  %p1047_p2 = por %p1046_p1, %p1045_p0 }
  0x27   : > { %352 = vmatpush.msra.mxu0 %v301_v34  ;;  %v261_v16 = vadd.f32 %v257_v4, %v219_v46  ;;  %v246_v21 = vmul.f32 0.33333334, %v242_v10  ;;  %v254_v22 = vadd.f32 %v250_v11, %v1207_v28  ;;  %v194_v24 = vrot.slane %v1265_v7, 1  ;;  %v312_v34 = vld [vmem:[%s1165_s27 + $0x88] sm:$0xff]  ;;  %s831_s27 = scalar_lea.sflag [#allocation3], %s161_s10 }
  0x28   : > { %381 = vmatpush.msra.mxu1 %v317_v38  ;;  %411 = vmatpush.msra.mxu2 %v332_v43  ;;  %v282_v31 = vmax.f32 %v274_v18, %v278_v19  ;;  %v1287_v32 = vrot.slane %v1270_v12, 1  ;;  %v207_v33 = vrot.slane %v1265_v7, 6  ;;  %v220_v38 = vrot.slane %v1265_v7, 2  ;;  %p1048_p3 = pnand %p1047_p2, %p1043_p13 }
  0x29   : > { %353 = vmatpush.msra.mxu0 %v300_v44  ;;  %v265_v27 = vmul.f32 0.2, %v261_v16  ;;  %v258_v36 = vadd.f32 %v254_v22, %v201_v53  ;;  %v1291_v37 = vadd.f32 %v274_v18, %v246_v21  ;;  %v221_v39 = vrot.slane %v1270_v12, 2 }
  0x2a   : > { %382 = vmatpush.msra.mxu1 %v316_v49  ;;  %412 = vmatpush.msra.mxu2 %v331_v54  ;;  %v196_v43 = vsel %vm190_vm0, %v194_v24, %v1287_v32  ;;  %v215_v44 = vsel %vm203_vm1, 0.0, %v207_v33  ;;  %v230_v46 = vsel %vm177_vm3, -inf, %v1273_v13  ;;  %v234_v50 = vsel %vm203_vm1, -inf, %v207_v33 }
  0x2b   : > { %354 = vmatpush.msra.mxu0 %v299_v55  ;;  %v1296_v41 = vadd.f32 %v281_v9, %v265_v27  ;;  %v262_v48 = vadd.f32 %v258_v36, %v227_v59  ;;  %v222_v49 = vsel %vm216_vm2, %v220_v38, %v221_v39  ;;  %v239_v51 = vadd.f32 %v189_v23, %v1265_v7  ;;  %v1388_v36 = vld [vmem:[%s1360_s8 + $0x120] sm:$0xff]  ;;  %v525_v38 = vld [vmem:[%s1360_s8 + $0x128] sm:$0xff] }
  0x2c   : > { %383 = vmatpush.msra.mxu1 %v315_v60  ;;  %413 = vmatpush.msra.mxu2 %v330_v1  ;;  %v251_v54 = vadd.f32 %v215_v44, %v189_v23  ;;  %v271_v55 = vmax.f32 %v230_v46, %v1265_v7  ;;  %v279_v56 = vmax.f32 %v234_v50, %v222_v49  ;;  %v182_v57 = vrot.slane %v1270_v12, 7 }
  0x2d   : > { %355 = vmatpush.msra.mxu0 %v298_v2  ;;  %v266_v58 = vmul.f32 0.2, %v262_v48  ;;  %v243_v59 = vadd.f32 %v239_v51, %v196_v43  ;;  %v208_v60 = vrot.slane %v1270_v12, 6  ;;  %v202_v0 = vsel %vm190_vm0, %v1287_v32, 0.0 }
  0x2e   : > { %384 = vmatpush.msra.mxu1 %v314_v8  ;;  %414 = vmatpush.msra.mxu2 %v329_v14  ;;  %v255_v61 = vadd.f32 %v251_v54, %v1265_v7  ;;  %v275_v62 = vmax.f32 %v271_v55, %v196_v43  ;;  %v183_v63 = vsel %vm177_vm3, %v1273_v13, %v182_v57  ;;  %v232_v3 = vsel %vm190_vm0, %v1287_v32, -inf }
  0x2f   : > { %356 = vmatpush.msra.mxu0 %v297_v15  ;;  %v1326_v1 = vadd.f32 %v282_v31, %v266_v58  ;;  %v247_v2 = vmul.f32 0.33333334, %v243_v59  ;;  %v236_v6 = vsel %vm216_vm2, %v221_v39, -inf  ;;  %v240_v8 = vadd.f32 %v183_v63, %v1270_v12  ;;  %v1378_v31 = vld [vmem:[%s1360_s8 + $0x140] sm:$0xff]  ;;  %v518_v58 = vld [vmem:[%s1360_s8 + $0xf0] sm:$0xff]  ;;  %v519_v59 = vld [vmem:[%s1360_s8 + $0xf8] sm:$0xff] }
  0x30   : > { %385 = vmatpush.msra.mxu1 %v313_v20  ;;  %415 = vmatpush.msra.mxu2 %v328_v25  ;;  %v259_v4 = vadd.f32 %v255_v61, %v196_v43  ;;  %v283_v5 = vmax.f32 %v275_v62, %v279_v56  ;;  %v228_v19 = vsel %vm216_vm2, %v221_v39, 0.0  ;;  %v1392_v39 = vld [vmem:[%s1360_s8 + $0x110] sm:$0xff]  ;;  %v517_v61 = vld [vmem:[%s1360_s8 + $0xe8] sm:$0xff] }
  0x31   : > { %357 = vmatpush.msra.mxu0 %v296_v30  ;;  %v1333_v9 = vadd.f32 %v275_v62, %v247_v2  ;;  %v244_v14 = vadd.f32 %v240_v8, %v202_v0  ;;  %546 = vmatpush.msra.mxu3 %v518_v58  ;;  %v514_v2 = vld [vmem:[%s1360_s8 + $0xd0] sm:$0xff] }
  0x32   : > { %386 = vmatpush.msra.mxu1 %v312_v34  ;;  %416 = vmatpush.msra.mxu2 %v327_v40  ;;  %v263_v11 = vadd.f32 %v259_v4, %v222_v49  ;;  %v527_v34 = vld [vmem:[%s1360_s8 + $0x138] sm:$0xff] }
  0x33   : > { %358 = vmatpush.msra.mxu0 %v295_v42  ;;  %417 = vmatmul.f32.vlgmr.msra.gmra.mxu2 %v1233_v45  ;;  %v209_v45 = vsel %vm203_vm1, %v207_v33, %v208_v60  ;;  %v248_v20 = vmul.f32 0.33333334, %v244_v14  ;;  %v1383_v33 = vld [vmem:[%s1360_s8 + $0x130] sm:$0xff]  ;;  %v523_v40 = vld [vmem:[%s1360_s8 + $0x118] sm:$0xff]  ;;  %v1398_v42 = vld [vmem:[%s1360_s8 + $0x100] sm:$0xff] }
  0x34   : > { %387 = vmatpush.msra.mxu1 %v311_v47  ;;  %920 = vmatmul.msk.f32.vlgmr.msra.gmra.mxu0 %vm1309_vm4, %v1210_v29  ;;  %v252_v10 = vadd.f32 %v209_v45, %v183_v63  ;;  %v272_v29 = vmax.f32 %v183_v63, %v1270_v12  ;;  %v267_v18 = vmul.f32 0.2, %v263_v11  ;;  %v516_v60 = vld [vmem:[%s1360_s8 + $0xe0] sm:$0xff]  ;;  %v510_v11 = vld [vmem:[%s1360_s8 + $0xb0] sm:$0xff] }
  0x35   : > { %388 = vmatmul.f32.vlgmr.msra.gmra.mxu1 %v1203_v26  ;;  %v280_v26 = vmax.f32 %v209_v45, %v236_v6  ;;  %547 = vmatpush.msra.mxu3 %v516_v60  ;;  %v515_v45 = vld [vmem:[%s1360_s8 + $0xd8] sm:$0xff]  ;;  %v496_v60 = vld [vmem:[%s1360_s8 + $0x40] sm:$0xff] }
  0x36   : > { %v256_v15 = vadd.f32 %v252_v10, %v1270_v12  ;;  %v276_v16 = vmax.f32 %v272_v29, %v232_v3  ;;  %v1340_v23 = vadd.f32 %v283_v5, %v267_v18  ;;  %604 = vmatpush.msrb.mxu1 %v519_v59  ;;  %v512_v5 = vld [vmem:[%s1360_s8 + $0xc0] sm:$0xff] }
  0x37   : > { %548 = vmatpush.msra.mxu3 %v514_v2  ;;  %v495_v2 = vld [vmem:[%s1360_s8 + $0x38] sm:$0xff] }
  0x38   : > { %v260_v21 = vadd.f32 %v256_v15, %v202_v0  ;;  %v284_v22 = vmax.f32 %v276_v16, %v280_v26  ;;  %v1342_v24 = vadd.f32 %v276_v16, %v248_v20  ;;  %605 = vmatpush.msrb.mxu1 %v517_v61  ;;  %v513_v26 = vld [vmem:[%s1360_s8 + $0xc8] sm:$0xff]  ;;  %v508_v20 = vld [vmem:[%s1360_s8 + $0xa0] sm:$0xff] }
  0x39   : > { %549 = vmatpush.msra.mxu3 %v512_v5  ;;  %v497_v61 = vld [vmem:[%s1360_s8 + $0x48] sm:$0xff]  ;;  %v491_v5 = vld [vmem:[%s1360_s8 + $0x18] sm:$0xff] }
  0x3a   : > { %v264_v25 = vadd.f32 %v260_v21, %v228_v19  ;;  %606 = vmatpush.msrb.mxu1 %v515_v45  ;;  %v511_v19 = vld [vmem:[%s1360_s8 + $0xb8] sm:$0xff]  ;;  %v492_v45 = vld [vmem:[%s1360_s8 + $0x20] sm:$0xff] }
  0x3b   : > { %923 = vmatmul.msk.f32.gmra.mxu2 %vm190_vm0, %v1218_v35  ;;  %v535_v35 = vld [vmem:[%s1360_s8 + $0x178] sm:$0xff]  ;;  %550 = vmatpush.msra.mxu3 %v510_v11 }
  0x3c   : > { %362 = vmatmul.f32.gmra.mxu0 %v1241_v52  ;;  %v268_v27 = vmul.f32 0.2, %v264_v25  ;;  %641 = vmatpush.msrb.mxu2 %v535_v35  ;;  %v1368_v52 = vld [vmem:[%s1360_s8 + $0x160] sm:$0xff]  ;;  %v506_v35 = vld [vmem:[%s1360_s8 + $0x90] sm:$0xff] }
  0x3d   : > { %391 = vmatmul.f32.gmra.mxu1 %v1207_v28  ;;  %v1363_v28 = vld [vmem:[%s1360_s8 + $0x170] sm:$0xff]  ;;  %551 = vmatpush.msra.mxu3 %v508_v20 }
  0x3e   : > { %v1346_v30 = vadd.f32 %v284_v22, %v268_v27  ;;  %583 = vmatpush.msrb.mxu0 %v1363_v28  ;;  %607 = vmatpush.msrb.mxu1 %v513_v26  ;;  %v509_v27 = vld [vmem:[%s1360_s8 + $0xa8] sm:$0xff] }
  0x3f   : > { %552 = vmatpush.msra.mxu3 %v506_v35 }
  0x40   : > { %584 = vmatpush.msrb.mxu0 %v1368_v52  ;;  %608 = vmatpush.msrb.mxu1 %v511_v19 }
  0x42   : > { %609 = vmatpush.msrb.mxu1 %v509_v27 }
  0x43   : > { %423 = vmatmul.f32.gmra.mxu2 %v196_v43  ;;  %v521_v43 = vld [vmem:[%s1360_s8 + $0x108] sm:$0xff] }
  0x44   : > { %922 = vmatmul.msk.f32.gmra.mxu0 %vm1309_vm4, %v1273_v13  ;;  %v531_v13 = vld [vmem:[%s1360_s8 + $0x158] sm:$0xff] }
  0x45   : > { %394 = vmatmul.f32.gmra.mxu1 %v1265_v7  ;;  %v533_v7 = vld [vmem:[%s1360_s8 + $0x168] sm:$0xff] }
  0x46   : > { %642 = vmatpush.msrb.mxu2 %v533_v7 }
  0x48   : > { %643 = vmatpush.msrb.mxu2 %v531_v13 }
  0x4b   : > { %924 = vmatmul.msk.f32.gmra.mxu2 %vm190_vm0, %v1287_v32  ;;  %v529_v32 = vld [vmem:[%s1360_s8 + $0x148] sm:$0xff] }
  0x4c   : > { %368 = vmatmul.f32.gmra.mxu0 %v183_v63  ;;  %644 = vmatpush.msrb.mxu2 %v529_v32  ;;  %v507_v32 = vld [vmem:[%s1360_s8 + $0x98] sm:$0xff] }
  0x4d   : > { %397 = vmatmul.f32.gmra.mxu1 %v1270_v12  ;;  %v1372_v12 = vld [vmem:[%s1360_s8 + $0x150] sm:$0xff] }
  0x4e   : > { %585 = vmatpush.msrb.mxu0 %v1372_v12  ;;  %645 = vmatpush.msrb.mxu2 %v527_v34  ;;  %v504_v34 = vld [vmem:[%s1360_s8 + $0x80] sm:$0xff] }
  0x4f   : > { %610 = vmatpush.msrb.mxu1 %v507_v32  ;;  %553 = vmatpush.msra.mxu3 %v504_v34 }
  0x50   : > { %586 = vmatpush.msrb.mxu0 %v1378_v31  ;;  %646 = vmatpush.msrb.mxu2 %v525_v38  ;;  %v505_v38 = vld [vmem:[%s1360_s8 + $0x88] sm:$0xff] }
  0x51   : > { %611 = vmatpush.msrb.mxu1 %v505_v38 }
  0x52   : > { %587 = vmatpush.msrb.mxu0 %v1383_v33  ;;  %647 = vmatpush.msrb.mxu2 %v523_v40 }
  0x54   : > { %588 = vmatpush.msrb.mxu0 %v1388_v36  ;;  %648 = vmatpush.msrb.mxu2 %v521_v43 }
  0x56   : > { %589 = vmatpush.msrb.mxu0 %v1392_v39 }
  0x58   : > { %590 = vmatpush.msrb.mxu0 %v1398_v42 }
  0xb1   : > { %v360_v44 = vpop.f32.mrf.mxu0 }
  0xb2   : > { %v389_v46 = vpop.f32.mrf.mxu1 }
  0xb3   : > { %v390_v47 = vadd.f32 %v389_v46, %v360_v44  ;;  %v502_v44 = vld [vmem:[%s1360_s8 + $0x70] sm:$0xff] }
  0xb4   : > { %554 = vmatpush.msra.mxu3 %v502_v44 }
  0xb6   : > { %v418_v48 = vpop.f32.mrf.mxu2 }
  0xb7   : > { %v419_v49 = vadd.f32 %v418_v48, %v390_v47  ;;  %v503_v47 = vld [vmem:[%s1360_s8 + $0x78] sm:$0xff]  ;;  %v500_v48 = vld [vmem:[%s1360_s8 + $0x60] sm:$0xff] }
  0xb8   : > { %612 = vmatpush.msrb.mxu1 %v503_v47  ;;  %555 = vmatpush.msra.mxu3 %v500_v48 }
  0xb9   : > { %v434_v50 = vmul.f32 0.01, %v419_v49  ;;  %vm430_vm5 = vcmp.gt.f32.partialorder %v419_v49, 0.0  ;;  %v363_v53 = vpop.f32.mrf.mxu0 }
  0xba   : > { %v392_v51 = vpop.f32.mrf.mxu1 }
  0xbb   : > { %v1402_v54 = vsel %vm430_vm5, %v419_v49, %v434_v50  ;;  %v393_v55 = vadd.f32 %v392_v51, %v363_v53  ;;  %v501_v50 = vld [vmem:[%s1360_s8 + $0x68] sm:$0xff]  ;;  %v498_v51 = vld [vmem:[%s1360_s8 + $0x50] sm:$0xff] }
  0xbc   : > { %468 = vrot.lane.b32.xlu0 %v1402_v54, %s1088_s9  ;;  %v446_v6 = vrot.slane %v1402_v54, 7  ;;  %v458_v8 = vrot.slane %v1402_v54, 1  ;;  %613 = vmatpush.msrb.mxu1 %v501_v50 }
  0xbd   : > { %556 = vmatpush.msra.mxu3 %v498_v51 }
  0xbe   : > { %v421_v56 = vpop.f32.mrf.mxu2  ;;  %v456_v11 = vsel %vm177_vm3, 0.0, %v446_v6 }
  0xbf   : > { %v422_v57 = vadd.f32 %v421_v56, %v393_v55  ;;  %v499_v55 = vld [vmem:[%s1360_s8 + $0x58] sm:$0xff]  ;;  %557 = vmatpush.msra.mxu3 %v496_v60 }
  0xc0   : > { %614 = vmatpush.msrb.mxu1 %v499_v55 }
  0xc1   : > { %v435_v62 = vmul.f32 0.01, %v422_v57  ;;  %vm431_vm6 = vcmp.gt.f32.partialorder %v422_v57, 0.0  ;;  %v366_v0 = vpop.f32.mrf.mxu0 }
  0xc2   : > { %v395_v63 = vpop.f32.mrf.mxu1  ;;  %615 = vmatpush.msrb.mxu1 %v497_v61 }
  0xc3   : > { %v439_v3 = vsel %vm431_vm6, %v422_v57, %v435_v62  ;;  %v396_v4 = vadd.f32 %v395_v63, %v366_v0  ;;  %v494_v63 = vld [vmem:[%s1360_s8 + $0x30] sm:$0xff] }
  0xc4   : > { %470 = vrot.lane.b32.xlu0 %v439_v3, %s1088_s9  ;;  %v447_v10 = vrot.slane %v439_v3, 7  ;;  %v459_v29 = vrot.slane %v439_v3, 1  ;;  %558 = vmatpush.msra.mxu3 %v494_v63  ;;  %v493_v3 = vld [vmem:[%s1360_s8 + $0x28] sm:$0xff] }
  0xc5   : > { %616 = vmatpush.msrb.mxu1 %v495_v2 }
  0xc6   : > { %v424_v14 = vpop.f32.mrf.mxu2  ;;  %v460_v15 = vsel %vm190_vm0, %v458_v8, %v459_v29  ;;  %v1422_v16 = vsel %vm177_vm3, %v446_v6, %v447_v10  ;;  %v1438_v43 = vsel %vm190_vm0, %v459_v29, 0.0  ;;  %559 = vmatpush.msra.mxu3 %v492_v45  ;;  %v488_v10 = vld [vmem:[%s1360_s8] sm:$0xff]  ;;  %v489_v29 = vld [vmem:[%s1360_s8 + $0x8] sm:$0xff] }
  0xc7   : > { %v425_v18 = vadd.f32 %v424_v14, %v396_v4  ;;  %926 = vmatmul.msk.f32.vlgmr.msrb.gmra.mxu0 %vm480_vm7, %v460_v15  ;;  %930 = vmatmul.msk.f32.vlgmr.msrb.gmra.mxu2 %vm480_vm7, %v460_v15  ;;  %v490_v4 = vld [vmem:[%s1360_s8 + $0x10] sm:$0xff] }
  0xc8   : > { %617 = vmatpush.msrb.mxu1 %v493_v3  ;;  %560 = vmatpush.msra.mxu3 %v490_v4 }
  0xc9   : > { %v436_v21 = vmul.f32 0.01, %v425_v18  ;;  %vm432_vm8 = vcmp.gt.f32.partialorder %v425_v18, 0.0  ;;  %v369_v25 = vpop.f32.mrf.mxu0 }
  0xca   : > { %v398_v22 = vpop.f32.mrf.mxu1  ;;  %618 = vmatpush.msrb.mxu1 %v491_v5  ;;  %561 = vmatpush.msra.mxu3 %v488_v10 }
  0xcb   : > { %v1430_v7 = vsel %vm432_vm8, %v425_v18, %v436_v21  ;;  %v399_v13 = vadd.f32 %v398_v22, %v369_v25 }
  0xcc   : > { %472 = vrot.lane.b32.xlu1 %v1430_v7, %s1088_s9  ;;  %v449_v56 = vrot.slane %v1430_v7, 7  ;;  %v461_v57 = vrot.slane %v1430_v7, 1  ;;  %619 = vmatpush.msrb.mxu1 %v489_v29 }
  0xcd   : > { %942 = vmatpush.msrb.mxu3 %v1363_v28 }
  0xce   : > { %v427_v40 = vpop.f32.mrf.mxu2 }
  0xcf   : > { %v428_v46 = vadd.f32 %v427_v40, %v399_v13  ;;  %931 = vmatmul.msk.f32.gmra.mxu2 %vm480_vm7, %v1438_v43  ;;  %943 = vmatpush.msrb.mxu3 %v1368_v52 }
  0xd1   : > { %v437_v49 = vmul.f32 0.01, %v428_v46  ;;  %vm433_vm9 = vcmp.gt.f32.partialorder %v428_v46, 0.0  ;;  %944 = vmatpush.msrb.mxu3 %v1372_v12 }
  0xd3   : > { %v441_v53 = vsel %vm433_vm9, %v428_v46, %v437_v49  ;;  %945 = vmatpush.msrb.mxu3 %v1378_v31 }
  0xd4   : > { %474 = vrot.lane.b32.xlu1 %v441_v53, %s1088_s9  ;;  %v450_v58 = vrot.slane %v441_v53, 7  ;;  %v462_v59 = vrot.slane %v441_v53, 1 }
  0xd5   : > { %946 = vmatpush.msrb.mxu3 %v1383_v33  ;;  %v457_v33 = vsel %vm177_vm3, 0.0, %v449_v56 }
  0xd6   : > { %v463_v62 = vsel %vm190_vm0, %v461_v57, %v462_v59  ;;  %v451_v0 = vsel %vm177_vm3, %v449_v56, %v450_v58  ;;  %v467_v8 = vsel %vm190_vm0, %v462_v59, 0.0 }
  0xd7   : > { %932 = vmatmul.msk.f32.gmra.mxu2 %vm480_vm7, %v463_v62  ;;  %947 = vmatpush.msrb.mxu3 %v1388_v36 }
  0xd9   : > { %948 = vmatpush.msrb.mxu3 %v1392_v39 }
  0xdb   : > { %949 = vmatpush.msrb.mxu3 %v1398_v42 }
  0xdf   : > { %933 = vmatmul.msk.f32.gmra.mxu2 %vm480_vm7, %v467_v8 }
 0x12e   : > { %v469_v26 = vpop.permute.xlu0 %468 }
 0x12f   : > { %v481_v28 = vsel %vm480_vm7, %v456_v11, %v469_v26 }
 0x130   : > { %562 = vmatmul.f32.vlgmr.msra.gmra.mxu3 %v481_v28  ;;  %620 = vmatmul.f32.vlgmr.msrb.gmra.mxu1 %v481_v28 }
 0x136   : > { %v471_v52 = vpop.permute.xlu0 %470 }
 0x137   : > { %v482_v12 = vsel %vm480_vm7, %v1422_v16, %v471_v52 }
 0x138   : > { %565 = vmatmul.f32.gmra.mxu3 %v482_v12  ;;  %623 = vmatmul.f32.gmra.mxu1 %v482_v12 }
 0x13e   : > { %v473_v31 = vpop.permute.xlu1 %472 }
 0x13f   : > { %v483_v36 = vsel %vm480_vm7, %v457_v33, %v473_v31 }
 0x140   : > { %568 = vmatmul.f32.gmra.mxu3 %v483_v36  ;;  %626 = vmatmul.f32.gmra.mxu1 %v483_v36 }
 0x144   : > { %v592_v18 = vpop.f32.mrf.mxu0 }
 0x146   : > { %v475_v39 = vpop.permute.xlu1 %474 }
 0x147   : > { %v484_v42 = vsel %vm480_vm7, %v451_v0, %v475_v39 }
 0x148   : > { %571 = vmatmul.f32.gmra.mxu3 %v484_v42  ;;  %629 = vmatmul.f32.gmra.mxu1 %v484_v42 }
 0x14a   : > { %v650_v54 = vpop.f32.mrf.mxu2 }
 0x150   : > { %927 = vmatmul.msk.f32.vlgmr.msrb.gmra.mxu3 %vm480_vm7, %v1438_v43 }
 0x152   : > { %v653_v25 = vpop.f32.mrf.mxu2 }
 0x158   : > { %928 = vmatmul.msk.f32.gmra.mxu3 %vm480_vm7, %v463_v62 }
 0x15a   : > { %v656_v44 = vpop.f32.mrf.mxu2 }
 0x160   : > { %929 = vmatmul.msk.f32.gmra.mxu3 %vm480_vm7, %v467_v8 }
 0x162   : > { %v659_v0 = vpop.f32.mrf.mxu2 }
 0x1ad   : > { %v621_v6 = vpop.f32.mrf.mxu1 }
 0x1ae   : > { %v651_v14 = vadd.f32 %v650_v54, %v621_v6 }
 0x1b0   : > { %v663_v15 = vsub.f32 0.0, %v651_v14 }
 0x1b2   : > { %v672_v16 = vmul.f32 1.442695, %v663_v15 }
 0x1b3   : > { %v563_v19 = vpop.f32.mrf.mxu3 }
 0x1b4   : > { %992 = vpow2.f32 %v672_v16  ;;  %v593_v20 = vadd.f32 %v592_v18, %v563_v19 }
 0x1b5   : > { %v624_v22 = vpop.f32.mrf.mxu1 }
 0x1b6   : > { %v662_v21 = vsub.f32 0.0, %v593_v20  ;;  %v654_v32 = vadd.f32 %v653_v25, %v624_v22 }
 0x1b8   : > { %v670_v27 = vmul.f32 1.442695, %v662_v21  ;;  %v665_v38 = vsub.f32 0.0, %v654_v32 }
 0x1ba   : > { %v993_v35 = vpop.eup %992  ;;  %994 = vpow2.f32 %v670_v27  ;;  %v676_v50 = vmul.f32 1.442695, %v665_v38 }
 0x1bb   : > { %v687_v7 = vadd.f32 1.0, %v993_v35  ;;  %v566_v13 = vpop.f32.mrf.mxu3 }
 0x1bd   : > { %996 = vrcp.f32 %v687_v7  ;;  %v627_v40 = vpop.f32.mrf.mxu1  ;;  %v720_v62 = vand.u32 2147483648, %v687_v7  ;;  %vm714_vm11 = vweird.f32 %v687_v7  ;;  %v718_v2 = vand.u32 2147483647, %v687_v7 }
 0x1be   : > { %v657_v47 = vadd.f32 %v656_v44, %v627_v40 }
 0x1bf   : > { %v721_v26 = vor.u32 1.1754944e-38, %v720_v62  ;;  %vm719_vm15 = vcmp.eq.f32.partialorder %v718_v2, 8.507059e+37 }
 0x1c0   : > { %v995_v34 = vpop.eup %994  ;;  %v667_v53 = vsub.f32 0.0, %v657_v47 }
 0x1c1   : > { %v686_v43 = vadd.f32 1.0, %v995_v34 }
 0x1c2   : > { %v680_v59 = vmul.f32 1.442695, %v667_v53 }
 0x1c3   : > { %v997_v46 = vpop.eup %996  ;;  %998 = vrcp.f32 %v686_v43  ;;  %v569_v48 = vpop.f32.mrf.mxu3  ;;  %v705_v45 = vand.u32 2147483648, %v686_v43  ;;  %v703_v8 = vand.u32 2147483647, %v686_v43  ;;  %vm699_vm14 = vweird.f32 %v686_v43 }
 0x1c4   : > { %v710_v49 = vmul.f32 %v997_v46, %v687_v7  ;;  %1000 = vpow2.f32 %v676_v50  ;;  %vm715_vm10 = vweird.f32 %v997_v46 }
 0x1c5   : > { %v630_v60 = vpop.f32.mrf.mxu1  ;;  %vm1487_vm12 = vmor %vm714_vm11, %vm715_vm10  ;;  %1002 = vpow2.f32 %v680_v59  ;;  %v706_v28 = vor.u32 1.1754944e-38, %v705_v45  ;;  %vm704_vm1 = vcmp.eq.f32.partialorder %v703_v8, 8.507059e+37 }
 0x1c6   : > { %v711_v51 = vsub.f32 1.0, %v710_v49  ;;  %v660_v10 = vadd.f32 %v659_v0, %v630_v60 }
 0x1c8   : > { %v712_v55 = vmul.f32 %v997_v46, %v711_v51  ;;  %v669_v33 = vsub.f32 0.0, %v660_v10 }
 0x1c9   : > { %v999_v56 = vpop.eup %998 }
 0x1ca   : > { %v695_v57 = vmul.f32 %v999_v56, %v686_v43  ;;  %v713_v58 = vadd.f32 %v997_v46, %v712_v55  ;;  %v1001_v3 = vpop.eup %1000  ;;  %vm700_vm13 = vweird.f32 %v999_v56  ;;  %v684_v15 = vmul.f32 1.442695, %v669_v33 }
 0x1cb   : > { %v572_v61 = vpop.f32.mrf.mxu3  ;;  %vm701_vm0 = vmor %vm699_vm14, %vm700_vm13  ;;  %v1494_v52 = vadd.f32 1.0, %v1001_v3  ;;  %v1003_v6 = vpop.eup %1002 }
 0x1cc   : > { %v696_v63 = vsub.f32 1.0, %v695_v57  ;;  %v717_v29 = vsel %vm1487_vm12, %v997_v46, %v713_v58  ;;  %v1501_v19 = vadd.f32 1.0, %v1003_v6 }
 0x1cd   : > { %v722_v12 = vsel %vm719_vm15, %v721_v26, %v717_v29  ;;  %1004 = vrcp.f32 %v1494_v52  ;;  %vm744_vm3 = vweird.f32 %v1494_v52  ;;  %v748_v58 = vand.u32 2147483647, %v1494_v52 }
 0x1ce   : > { %v697_v5 = vmul.f32 %v999_v56, %v696_v63  ;;  %v818_v14 = vmul.f32 %v722_v12, %v1296_v41  ;;  %1006 = vpow2.f32 %v684_v15  ;;  %vm774_vm9 = vweird.f32 %v1501_v19 }
 0x1cf   : > { %vm749_vm6 = vcmp.eq.f32.partialorder %v748_v58, 8.507059e+37  ;;  %v780_v26 = vand.u32 2147483648, %v1501_v19 }
 0x1d0   : > { %v698_v11 = vadd.f32 %v999_v56, %v697_v5 }
 0x1d1   : > { %v781_v15 = vor.u32 1.1754944e-38, %v780_v26 }
 0x1d2   : > { %v702_v31 = vsel %vm701_vm0, %v999_v56, %v698_v11  ;;  %v750_v56 = vand.u32 2147483648, %v1494_v52 }
 0x1d3   : > { %v707_v36 = vsel %vm704_vm1, %v706_v28, %v702_v31  ;;  %v595_v39 = vpop.f32.mrf.mxu3  ;;  %v1005_v21 = vpop.eup %1004 }
 0x1d4   : > { %v814_v42 = vmul.f32 %v707_v36, %v1277_v17  ;;  %v596_v54 = vadd.f32 %v595_v39, %v566_v13  ;;  %v740_v41 = vmul.f32 %v1005_v21, %v1494_v52  ;;  %v1007_v27 = vpop.eup %1006  ;;  %vm745_vm2 = vweird.f32 %v1005_v21 }
 0x1d5   : > { %v1510_v38 = vadd.f32 1.0, %v1007_v27  ;;  %vm746_vm4 = vmor %vm744_vm3, %vm745_vm2  ;;  %v751_v0 = vor.u32 1.1754944e-38, %v750_v56  ;;  %v778_v52 = vand.u32 2147483647, %v1501_v19 }
 0x1d6   : > { %v664_v16 = vsub.f32 0.0, %v596_v54  ;;  %v822_v18 = vadd.f32 %v818_v14, %v814_v42  ;;  %v741_v32 = vsub.f32 1.0, %v740_v41 }
 0x1d7   : > { %vm779_vm14 = vcmp.eq.f32.partialorder %v778_v52, 8.507059e+37  ;;  %vm804_vm3 = vweird.f32 %v1510_v38 }
 0x1d8   : > { %v674_v20 = vmul.f32 1.442695, %v664_v16  ;;  %826 = vst [vmem:[%s1503_s17] sm:$0xff] %v822_v18  ;;  %v742_v46 = vmul.f32 %v1005_v21, %v741_v32  ;;  %v808_v32 = vand.u32 2147483647, %v1510_v38 }
 0x1da   : > { %1008 = vpow2.f32 %v674_v20  ;;  %v743_v55 = vadd.f32 %v1005_v21, %v742_v46 }
 0x1db   : > { %v598_v17 = vpop.f32.mrf.mxu3  ;;  %1010 = vrcp.f32 %v1501_v19 }
 0x1dc   : > { %v599_v22 = vadd.f32 %v598_v17, %v569_v48  ;;  %v747_v62 = vsel %vm746_vm4, %v1005_v21, %v743_v55 }
 0x1dd   : > { %v752_v5 = vsel %vm749_vm6, %v751_v0, %v747_v62  ;;  %vm809_vm6 = vcmp.eq.f32.partialorder %v808_v32, 8.507059e+37 }
 0x1de   : > { %v666_v25 = vsub.f32 0.0, %v599_v22  ;;  %v819_v33 = vmul.f32 %v752_v5, %v1326_v1 }
 0x1e0   : > { %v678_v35 = vmul.f32 1.442695, %v666_v25  ;;  %v1009_v7 = vpop.eup %1008 }
 0x1e1   : > { %v1508_v13 = vpop.eup %1010  ;;  %v688_v34 = vadd.f32 1.0, %v1009_v7 }
 0x1e2   : > { %1012 = vpow2.f32 %v678_v35  ;;  %v770_v43 = vmul.f32 %v1508_v13, %v1501_v19  ;;  %vm775_vm7 = vweird.f32 %v1508_v13 }
 0x1e3   : > { %v601_v40 = vpop.f32.mrf.mxu3  ;;  %1014 = vrcp.f32 %v688_v34  ;;  %v735_v63 = vand.u32 2147483648, %v688_v34  ;;  %v733_v45 = vand.u32 2147483647, %v688_v34  ;;  %vm729_vm8 = vweird.f32 %v688_v34  ;;  %vm776_vm12 = vmor %vm774_vm9, %vm775_vm7 }
 0x1e4   : > { %v602_v44 = vadd.f32 %v601_v40, %v572_v61  ;;  %1016 = vrcp.f32 %v1510_v38  ;;  %v771_v49 = vsub.f32 1.0, %v770_v43 }
 0x1e5   : > { %v736_v11 = vor.u32 1.1754944e-38, %v735_v63  ;;  %vm734_vm11 = vcmp.eq.f32.partialorder %v733_v45, 8.507059e+37 }
 0x1e6   : > { %v668_v47 = vsub.f32 0.0, %v602_v44  ;;  %v772_v60 = vmul.f32 %v1508_v13, %v771_v49 }
 0x1e8   : > { %v1013_v48 = vpop.eup %1012  ;;  %v682_v51 = vmul.f32 1.442695, %v668_v47  ;;  %v773_v8 = vadd.f32 %v1508_v13, %v772_v60 }
 0x1e9   : > { %v1515_v50 = vadd.f32 1.0, %v1013_v48  ;;  %v1015_v53 = vpop.eup %1014 }
 0x1ea   : > { %v725_v57 = vmul.f32 %v1015_v53, %v688_v34  ;;  %v1521_v59 = vpop.eup %1016  ;;  %vm730_vm5 = vweird.f32 %v1015_v53  ;;  %v777_v54 = vsel %vm776_vm12, %v1508_v13, %v773_v8  ;;  %v810_v13 = vand.u32 2147483648, %v1510_v38 }
 0x1eb   : > { %1018 = vrcp.f32 %v1515_v50  ;;  %v800_v3 = vmul.f32 %v1521_v59, %v1510_v38  ;;  %vm731_vm10 = vmor %vm729_vm8, %vm730_vm5  ;;  %v765_v14 = vand.u32 2147483648, %v1515_v50  ;;  %v763_v18 = vand.u32 2147483647, %v1515_v50 }
 0x1ec   : > { %1020 = vpow2.f32 %v682_v51  ;;  %v726_v61 = vsub.f32 1.0, %v725_v57  ;;  %v782_v19 = vsel %vm779_vm14, %v781_v15, %v777_v54  ;;  %vm759_vm15 = vweird.f32 %v1515_v50 }
 0x1ed   : > { %v801_v36 = vsub.f32 1.0, %v800_v3  ;;  %v766_v17 = vor.u32 1.1754944e-38, %v765_v14  ;;  %vm764_vm1 = vcmp.eq.f32.partialorder %v763_v18, 8.507059e+37  ;;  %v820_v41 = vmul.f32 %v782_v19, %v1340_v23 }
 0x1ee   : > { %v727_v2 = vmul.f32 %v1015_v53, %v726_v61  ;;  %vm805_vm2 = vweird.f32 %v1521_v59 }
 0x1ef   : > { %v802_v20 = vmul.f32 %v1521_v59, %v801_v36  ;;  %vm806_vm4 = vmor %vm804_vm3, %vm805_vm2 }
 0x1f0   : > { %v728_v10 = vadd.f32 %v1015_v53, %v727_v2 }
 0x1f1   : > { %v1019_v4 = vpop.eup %1018  ;;  %v803_v27 = vadd.f32 %v1521_v59, %v802_v20 }
 0x1f2   : > { %v1021_v29 = vpop.eup %1020  ;;  %v755_v28 = vmul.f32 %v1019_v4, %v1515_v50  ;;  %v732_v12 = vsel %vm731_vm10, %v1015_v53, %v728_v10  ;;  %vm760_vm13 = vweird.f32 %v1019_v4 }
 0x1f3   : > { %v692_v31 = vadd.f32 1.0, %v1021_v29  ;;  %v737_v39 = vsel %vm734_vm11, %v736_v11, %v732_v12  ;;  %vm761_vm0 = vmor %vm759_vm15, %vm760_vm13  ;;  %v807_v43 = vsel %vm806_vm4, %v1521_v59, %v803_v27 }
 0x1f4   : > { %v756_v42 = vsub.f32 1.0, %v755_v28  ;;  %v815_v6 = vmul.f32 %v737_v39, %v1291_v37 }
 0x1f5   : > { %1022 = vrcp.f32 %v692_v31  ;;  %v795_v23 = vand.u32 2147483648, %v692_v31  ;;  %v793_v46 = vand.u32 2147483647, %v692_v31  ;;  %vm789_vm7 = vweird.f32 %v692_v31 }
 0x1f6   : > { %v757_v16 = vmul.f32 %v1019_v4, %v756_v42  ;;  %v823_v1 = vadd.f32 %v819_v33, %v815_v6 }
 0x1f7   : > { %v796_v48 = vor.u32 1.1754944e-38, %v795_v23  ;;  %vm794_vm9 = vcmp.eq.f32.partialorder %v793_v46, 8.507059e+37 }
 0x1f8   : > { %v758_v21 = vadd.f32 %v1019_v4, %v757_v16  ;;  %827 = vst [vmem:[%s1503_s17 + $0x8] sm:$0xff] %v823_v1 }
 0x1fa   : > { %v762_v37 = vsel %vm761_vm0, %v1019_v4, %v758_v21 }
 0x1fb   : > { %v1023_v22 = vpop.eup %1022  ;;  %v767_v25 = vsel %vm764_vm1, %v766_v17, %v762_v37 }
 0x1fc   : > { %v816_v35 = vmul.f32 %v767_v25, %v1333_v9  ;;  %v785_v7 = vmul.f32 %v1023_v22, %v692_v31  ;;  %vm790_vm5 = vweird.f32 %v1023_v22  ;;  %v811_v9 = vor.u32 1.1754944e-38, %v810_v13 }
 0x1fd   : > { %vm791_vm8 = vmor %vm789_vm7, %vm790_vm5 }
 0x1fe   : > { %v786_v34 = vsub.f32 1.0, %v785_v7  ;;  %v824_v40 = vadd.f32 %v820_v41, %v816_v35  ;;  %v812_v47 = vsel %vm809_vm6, %v811_v9, %v807_v43 }
 0x1ff   : > { %v821_v51 = vmul.f32 %v812_v47, %v1346_v30 }
 0x200   : > { %v787_v44 = vmul.f32 %v1023_v22, %v786_v34  ;;  %828 = vst [vmem:[%s1503_s17 + $0x10] sm:$0xff] %v824_v40 }
 0x202   : > { %v788_v38 = vadd.f32 %v1023_v22, %v787_v44 }
 0x204   : > { %v792_v49 = vsel %vm791_vm8, %v1023_v22, %v788_v38 }
 0x205   : > { %v797_v50 = vsel %vm794_vm9, %v796_v48, %v792_v49 }
 0x206   : > { %v817_v53 = vmul.f32 %v797_v50, %v1342_v24 }
 0x208   : > { %v825_v55 = vadd.f32 %v821_v51, %v817_v53 }
 0x20a   : > { %829 = vst [vmem:[%s1503_s17 + $0x18] sm:$0xff] %v825_v55 }
 0x20b   : > { %1051 = shalt.err (!%p1048_p3)
}
 0x20c   : > { %s1089_s8 = smov 128   ;;  %s1090_s9 = smov 8  }
 0x20d   : > { %950 = dma.vmem_to_hbm [thread:$0]  (%p1149_p5), %s844_s16, 512, %s846_s26, %s831_s27, %s1089_s8, %s1089_s8, %s1090_s9  }
 0x20e PF: > { %p956_p4 = scmp.ge.s32.totalorder %s1086_s15, 2  ;;  %s860_s10 = sand.u32 1, %s1074_s12  }
 0x20f   : > { %s861_s11 = scalar_lea.sflag [#allocation3], %s860_s10 }
 0x210   : > { %p953_p7 = pnand %p956_p4, %p1153_p6 }
 0x212   : > { %p954_p8 = pneg %p953_p7 }
 0x214   : > { %1069 = dma.done.wait (%p954_p8), %s861_s11, 512  }
 0x215   : > { %1071 = vsyncadd (%p954_p8), %s861_s11, 4294966784  ;;  %p13_p9 = scmp.ge.s32.totalorder %s1136_s18, 10   ;;  %s1598_s12 = smov %s1078_s13 }
 0x216   : > { %s1599_s13 = smov %s1082_s14  ;;  %s1600_s14 = smov %s1147_s21 }
 0x217   : > { %s1601_s15 = smov %s1136_s18  ;;  %15 = sbr.rel (!%p13_p9) target bundleno = 3 (0x3), region = 69 }
 0x21c   :  { %867 = vsyncpa [#allocation3], 1 }
 0x21d   :  { %869 = vsyncpa [#allocation3 + $0x1], 1 }

</bundles_post_ra>
